<compile_context>
chip_gen: v7x
topology: tpu7x:2x2x1
jax: 0.10.0
libtpu: 0.0.40
codegen_flags: <defaults>
</compile_context>

<pallas_src>
import functools

import numpy as np
import jax
import jax.numpy as jnp
from jax import lax
from jax.experimental import pallas as pl
from jax.experimental.pallas import tpu as pltpu

# s = np.log(2.0**126 / 2) / 2 = 125 * ln(2) / 2
_S = float(np.log(2.0 ** 126 / 2.0) / 2.0)
_NUM_ATTR = 40


def _combine_loss_kernel(gf_ref, wsq_ref, wd_ref, tgt_ref, out_ref, *, tb, batch, s):
    """One batch tile: two (TB,40) matmuls + softplus-margin CE, reduced to one scalar."""
    gf = gf_ref[...]                                    # (TB, D)  f32
    tgt = tgt_ref[...]                                  # (TB, 40) i32

    # ||gf_b * mask_i||^2 for every (sample, attribute); keep this path in f32.
    norms2 = jnp.dot(gf * gf, wsq_ref[...], preferred_element_type=jnp.float32)

    # Logit margin numerator (logit1 - logit0 before normalization):
    #   gf @ (mask^T * (w1_normed - w0_normed)); MXU dtype follows wd (f32 or bf16).
    d = jnp.dot(gf.astype(wd_ref.dtype), wd_ref[...],
                preferred_element_type=jnp.float32)     # (TB, 40) f32

    # Mask batch-padding rows of the (possibly ragged) last tile.
    row = pl.program_id(0) * tb + lax.broadcasted_iota(jnp.int32, (tb, 1), 0)
    valid = row < batch                                 # (TB, 1) bool

    # Padded rows get norms2 := 1 so rsqrt stays finite; real all-zero rows keep
    # PyTorch's divide-by-zero behavior (nan), matching the reference exactly.
    inv_norm = lax.rsqrt(jnp.where(valid, norms2, 1.0))
    margin = d * (inv_norm * jnp.float32(s))            # = logit1 - logit0
    # 2-class cross entropy: lse - correct == softplus(margin) if tgt==0 else softplus(-margin)
    z = jnp.where(tgt == 0, margin, -margin)
    elem = jnp.maximum(z, 0.0) + jnp.log(1.0 + jnp.exp(-jnp.abs(z)))
    elem = jnp.where(valid, elem, 0.0)

    # mean-per-attribute then sum-over-attributes == (sum of everything) / B,
    # so one scalar partial per tile is enough; the wrapper divides by the full B.
    tile_sum = jnp.sum(elem)
    out_ref[0] = jnp.broadcast_to(tile_sum, (8, 128))   # lane-dense, unmasked store


def _prepare_weights(maskweight, clsweight, mxu_dtype=jnp.float32):
    """Batch-invariant weight prep, hoisted out of the kernel (tiny, reused by all tiles).

    Folds the stride-2 deinterleave, per-column L2 normalization, transpose and
    mask-multiply into two (D, 40) effective matrices. If weights are static across
    many loss calls, jit/cache this separately.
    """
    mw = maskweight.astype(jnp.float32)                 # (40, D)
    cw = clsweight.astype(jnp.float32)                  # (D, 80)
    w0 = cw[:, 0::2]                                    # (D, 40) class-0 columns
    w1 = cw[:, 1::2]                                    # (D, 40) class-1 columns
    w0n = w0 * lax.rsqrt(jnp.sum(w0 * w0, axis=0, keepdims=True))
    w1n = w1 * lax.rsqrt(jnp.sum(w1 * w1, axis=0, keepdims=True))
    mw_t = mw.T                                         # (D, 40)
    wsq = mw_t * mw_t                                   # RHS for ||gf*mask||^2 (f32)
    wd = (mw_t * (w1n - w0n)).astype(mxu_dtype)         # RHS for the logit margin
    return wsq, wd


def combine_loss(globalfea, maskweight, clsweight, target, *,
                 tile_b=512, mxu_dtype=jnp.float32):
    """globalfea (B,D), maskweight (40,D), clsweight (D,80), target (B,40) -> scalar loss.

    mxu_dtype=jnp.bfloat16 enables the bf16 MXU fast path for the margin matmul
    (recommended on v6e/v7x); the norms^2 / rsqrt / CE path always stays f32.
    """
    gf = globalfea.astype(jnp.float32)
    tgt = target.astype(jnp.int32)
    B, D = gf.shape
    wsq, wd = _prepare_weights(maskweight, clsweight, mxu_dtype)

    # Batch tile: multiple of 8, sized so the double-buffered gf tile stays well under
    # scoped VMEM on every chip (~8 MiB budget for gf's two pipeline buffers; fits the
    # 16 MiB v5e default and v7x's smaller physical VMEM).
    budget = 8 * 1024 * 1024
    tb_cap = max(8, (budget // (2 * D * 4)) // 8 * 8)
    tb = int(min(tile_b, tb_cap, pl.cdiv(B, 8) * 8))
    tb = max(8, (tb // 8) * 8)
    num_tiles = pl.cdiv(B, tb)
    b_pad = num_tiles * tb
    if b_pad != B:
        gf = jnp.pad(gf, ((0, b_pad - B), (0, 0)))
        tgt = jnp.pad(tgt, ((0, b_pad - B), (0, 0)))

    kernel = functools.partial(_combine_loss_kernel, tb=tb, batch=B, s=_S)

    flops = 4 * B * D * _NUM_ATTR                        # two (B,D)@(D,40) matmuls
    transcendentals = 3 * B * _NUM_ATTR                  # rsqrt + exp + log per element
    bytes_accessed = (gf.size * 4 + tgt.size * 4 + wsq.size * 4
                      + wd.size * wd.dtype.itemsize + num_tiles * 8 * 128 * 4)

    out = pl.pallas_call(
        kernel,
        out_shape=jax.ShapeDtypeStruct((num_tiles, 8, 128), jnp.float32),
        grid_spec=pltpu.PrefetchScalarGridSpec(
            num_scalar_prefetch=0,
            grid=(num_tiles,),
            in_specs=[
                pl.BlockSpec((tb, D), lambda i: (i, 0)),          # gf tile (pipelined)
                pl.BlockSpec((D, _NUM_ATTR), lambda i: (0, 0)),   # wsq, resident
                pl.BlockSpec((D, _NUM_ATTR), lambda i: (0, 0)),   # wd, resident
                pl.BlockSpec((tb, _NUM_ATTR), lambda i: (i, 0)),  # target tile
            ],
            out_specs=pl.BlockSpec((1, 8, 128), lambda i: (i, 0, 0)),
        ),
        compiler_params=pltpu.CompilerParams(
            dimension_semantics=("parallel",)),
        cost_estimate=pl.CostEstimate(
            flops=flops,
            transcendentals=transcendentals,
            bytes_accessed=int(bytes_accessed)),
    )(gf, wsq, wd, tgt)

    return jnp.sum(out[:, 0, 0]) / jnp.float32(B)


def _reference_combine_loss(globalfea, maskweight, clsweight, target):
    """Pure-JAX mirror of the PyTorch loop, for verification."""
    losses = 0.0
    gf = globalfea.astype(jnp.float32)
    for i in range(_NUM_ATTR):
        selectmask = maskweight[i, :]
        attributefea = gf * selectmask
        norm = jnp.linalg.norm(attributefea, axis=1)
        attributefea = attributefea / norm[:, None] * _S
        w = clsweight[:, i * 2:i * 2 + 2]
        w = w / jnp.linalg.norm(w, axis=0)
        predict = attributefea @ w
        gt = target[:, i].astype(jnp.int32)
        lse = jax.nn.logsumexp(predict, axis=-1)
        correct = jnp.take_along_axis(predict, gt[:, None], axis=1)[:, 0]
        losses = losses + jnp.mean(lse - correct)
    return losses


if __name__ == "__main__":
    key = jax.random.PRNGKey(0)
    k1, k2, k3, k4, k5, k6 = jax.random.split(key, 6)

    B, D = 8, 32
    globalfea = jax.random.normal(k1, (B, D), dtype=jnp.float32)
    maskweight = jax.random.uniform(k2, (_NUM_ATTR, D), dtype=jnp.float32,
                                    minval=0.1, maxval=1.0)
    clsweight = jax.random.normal(k3, (D, 2 * _NUM_ATTR), dtype=jnp.float32)
    target = jax.random.randint(k4, (B, _NUM_ATTR), 0, 2, dtype=jnp.int32)

    # f32 path (default)
    loss = combine_loss(globalfea, maskweight, clsweight, target)
    jax.block_until_ready(loss)
    ref = _reference_combine_loss(globalfea, maskweight, clsweight, target)
    np.testing.assert_allclose(np.asarray(loss), np.asarray(ref), rtol=1e-4, atol=1e-3)

    # Ragged batch + multi-tile grid (exercises padding mask and the parallel grid axis).
    B2 = 37
    gf2 = jax.random.normal(k5, (B2, D), dtype=jnp.float32)
    tgt2 = jax.random.randint(k6, (B2, _NUM_ATTR), 0, 2, dtype=jnp.int32)
    loss2 = combine_loss(gf2, maskweight, clsweight, tgt2, tile_b=8)
    jax.block_until_ready(loss2)
    ref2 = _reference_combine_loss(gf2, maskweight, clsweight, tgt2)
    np.testing.assert_allclose(np.asarray(loss2), np.asarray(ref2), rtol=1e-4, atol=1e-3)

    # bf16 MXU fast path for the margin matmul (v6e/v7x); norms/CE stay f32.
    loss3 = combine_loss(globalfea, maskweight, clsweight, target, mxu_dtype=jnp.bfloat16)
    jax.block_until_ready(loss3)
    np.testing.assert_allclose(np.asarray(loss3), np.asarray(ref), rtol=2e-2, atol=0.5)

    print("KERNEL_OK")
</pallas_src>

<mosaic_0001>
module attributes {stable_mosaic.version = 11 : i64} {
  func.func @_combine_loss_kernel(%arg0: i32, %arg1: memref<8x32xf32, #tpu.memory_space<vmem>>, %arg2: memref<32x40xf32, #tpu.memory_space<vmem>>, %arg3: memref<32x40xf32, #tpu.memory_space<vmem>>, %arg4: memref<8x40xi32, #tpu.memory_space<vmem>>, %arg5: memref<1x8x128xf32, #tpu.memory_space<vmem>>) attributes {dimension_semantics = [#tpu.dimension_semantics<parallel>], iteration_bounds = array<i64: 1>, scalar_prefetch = 0 : i64, scratch_operands = 0 : i64, tpu.core_type = #tpu.core_type<tc>, window_params = [{transform_indices = @transform_0, window_bounds = array<i64: 8, 32>}, {pipeline_mode = #tpu.pipeline_mode<synchronous>, transform_indices = @transform_1, window_bounds = array<i64: 32, 40>}, {pipeline_mode = #tpu.pipeline_mode<synchronous>, transform_indices = @transform_2, window_bounds = array<i64: 32, 40>}, {transform_indices = @transform_3, window_bounds = array<i64: 8, 40>}, {transform_indices = @transform_4, window_bounds = array<i64: 1, 8, 128>}]} {
    %c0 = arith.constant 0 : index
    %c0_0 = arith.constant 0 : index
    %0 = vector.load %arg1[%c0, %c0_0] : memref<8x32xf32, #tpu.memory_space<vmem>>, vector<8x32xf32>
    %c0_1 = arith.constant 0 : index
    %c0_2 = arith.constant 0 : index
    %1 = vector.load %arg4[%c0_1, %c0_2] : memref<8x40xi32, #tpu.memory_space<vmem>>, vector<8x40xi32>
    %2 = arith.mulf %0, %0 : vector<8x32xf32>
    %c0_3 = arith.constant 0 : index
    %c0_4 = arith.constant 0 : index
    %3 = vector.load %arg2[%c0_3, %c0_4] : memref<32x40xf32, #tpu.memory_space<vmem>>, vector<32x40xf32>
    %cst = arith.constant dense<0.000000e+00> : vector<8x40xf32>
    %4 = tpu.matmul %2, %3, %cst {dimension_numbers = #tpu.dot_dimension_numbers<[1], [0], [0], [1], [0, 0, 1, 1], [], []>} : vector<8x32xf32>, vector<32x40xf32>, vector<8x40xf32> -> vector<8x40xf32>
    %c0_5 = arith.constant 0 : index
    %c0_6 = arith.constant 0 : index
    %5 = vector.load %arg3[%c0_5, %c0_6] : memref<32x40xf32, #tpu.memory_space<vmem>>, vector<32x40xf32>
    %cst_7 = arith.constant dense<0.000000e+00> : vector<8x40xf32>
    %6 = tpu.matmul %0, %5, %cst_7 {dimension_numbers = #tpu.dot_dimension_numbers<[1], [0], [0], [1], [0, 0, 1, 1], [], []>} : vector<8x32xf32>, vector<32x40xf32>, vector<8x40xf32> -> vector<8x40xf32>
    %c8_i32 = arith.constant 8 : i32
    %7 = arith.muli %arg0, %c8_i32 : i32
    %8 = tpu.iota {dimensions = array<i32: 0>} : vector<8x1xi32>
    %9 = vector.broadcast %7 : i32 to vector<8x1xi32>
    %10 = arith.addi %9, %8 : vector<8x1xi32>
    %c8_i32_8 = arith.constant 8 : i32
    %11 = vector.broadcast %c8_i32_8 : i32 to vector<8x1xi32>
    %12 = arith.cmpi slt, %10, %11 : vector<8x1xi32>
    %cst_9 = arith.constant 1.000000e+00 : f32
    %13 = vector.shape_cast %12 : vector<8x1xi1> to vector<8x1xi1>
    %14 = vector.broadcast %13 : vector<8x1xi1> to vector<8x40xi1>
    %15 = vector.broadcast %cst_9 : f32 to vector<8x40xf32>
    %16 = arith.select %14, %4, %15 : vector<8x40xi1>, vector<8x40xf32>
    %17 = math.rsqrt %16 : vector<8x40xf32>
    %cst_10 = arith.constant 43.3216972 : f32
    %18 = vector.broadcast %cst_10 : f32 to vector<8x40xf32>
    %19 = arith.mulf %17, %18 : vector<8x40xf32>
    %20 = arith.mulf %6, %19 : vector<8x40xf32>
    %c0_i32 = arith.constant 0 : i32
    %21 = vector.broadcast %c0_i32 : i32 to vector<8x40xi32>
    %22 = arith.cmpi eq, %1, %21 : vector<8x40xi32>
    %cst_11 = arith.constant 0.000000e+00 : f32
    %23 = vector.broadcast %cst_11 : f32 to vector<8x40xf32>
    %24 = arith.subf %23, %20 : vector<8x40xf32>
    %25 = arith.select %22, %20, %24 : vector<8x40xi1>, vector<8x40xf32>
    %cst_12 = arith.constant 0.000000e+00 : f32
    %26 = vector.broadcast %cst_12 : f32 to vector<8x40xf32>
    %27 = arith.maximumf %25, %26 : vector<8x40xf32>
    %28 = math.absf %25 : vector<8x40xf32>
    %cst_13 = arith.constant 0.000000e+00 : f32
    %29 = vector.broadcast %cst_13 : f32 to vector<8x40xf32>
    %30 = arith.subf %29, %28 : vector<8x40xf32>
    %31 = math.exp %30 : vector<8x40xf32>
    %cst_14 = arith.constant 1.000000e+00 : f32
    %32 = vector.broadcast %cst_14 : f32 to vector<8x40xf32>
    %33 = arith.addf %32, %31 : vector<8x40xf32>
    %34 = math.log %33 : vector<8x40xf32>
    %35 = arith.addf %27, %34 : vector<8x40xf32>
    %cst_15 = arith.constant 0.000000e+00 : f32
    %36 = vector.shape_cast %12 : vector<8x1xi1> to vector<8x1xi1>
    %37 = vector.broadcast %36 : vector<8x1xi1> to vector<8x40xi1>
    %38 = vector.broadcast %cst_15 : f32 to vector<8x40xf32>
    %39 = arith.select %37, %35, %38 : vector<8x40xi1>, vector<8x40xf32>
    %40 = vector.shape_cast %39 : vector<8x40xf32> to vector<1x8x40xf32>
    %cst_16 = arith.constant dense<0.000000e+00> : vector<1xf32>
    %41 = vector.multi_reduction <add>, %40, %cst_16 [1, 2] : vector<1x8x40xf32> to vector<1xf32>
    %42 = vector.shape_cast %41 : vector<1xf32> to vector<1x1x1xf32>
    %43 = vector.extract %42[0, 0, 0] : f32 from vector<1x1x1xf32>
    %44 = vector.broadcast %43 : f32 to vector<8x128xf32>
    %c0_17 = arith.constant 0 : index
    %c0_18 = arith.constant 0 : index
    %c0_19 = arith.constant 0 : index
    %45 = vector.load %arg5[%c0_17, %c0_18, %c0_19] : memref<1x8x128xf32, #tpu.memory_space<vmem>>, vector<1x8x128xf32>
    %46 = vector.shape_cast %45 : vector<1x8x128xf32> to vector<8x128xf32>
    %47 = vector.shape_cast %44 : vector<8x128xf32> to vector<1x8x128xf32>
    tpu.vector_store %arg5[%c0_17, %c0_18, %c0_19], %47 {strides = array<i32>} : memref<1x8x128xf32, #tpu.memory_space<vmem>>, vector<1x8x128xf32>,
    return
  }
  func.func @transform_0(%arg0: i32) -> (i32, i32) {
    %c0_i32 = arith.constant 0 : i32
    %c0_i32_0 = arith.constant 0 : i32
    return %arg0, %c0_i32 : i32, i32
  }
  func.func @transform_1(%arg0: i32) -> (i32, i32) {
    %c0_i32 = arith.constant 0 : i32
    %c0_i32_0 = arith.constant 0 : i32
    %c0_i32_1 = arith.constant 0 : i32
    return %c0_i32, %c0_i32_0 : i32, i32
  }
  func.func @transform_2(%arg0: i32) -> (i32, i32) {
    %c0_i32 = arith.constant 0 : i32
    %c0_i32_0 = arith.constant 0 : i32
    %c0_i32_1 = arith.constant 0 : i32
    return %c0_i32, %c0_i32_0 : i32, i32
  }
  func.func @transform_3(%arg0: i32) -> (i32, i32) {
    %c0_i32 = arith.constant 0 : i32
    %c0_i32_0 = arith.constant 0 : i32
    return %arg0, %c0_i32 : i32, i32
  }
  func.func @transform_4(%arg0: i32) -> (i32, i32, i32) {
    %c0_i32 = arith.constant 0 : i32
    %c0_i32_0 = arith.constant 0 : i32
    %c0_i32_1 = arith.constant 0 : i32
    return %arg0, %c0_i32, %c0_i32_0 : i32, i32, i32
  }
}

</mosaic_0001>

<bundles_post_ra>
// kernel: tpu_custom_call.1
= control target key start
LH: loop header
LB: loop body
LE: loop exit
PB: predicated region body
PF: predicated region fallthrough
CT: control target
= control target key end

     0   :  { %9 = vsyncpa [#allocation3], 0  ;;  %s517_s0 = inlined_call_operand.hbm [shape: f32[8,32], index: 0, kind: input, shape index: {}]   ;;  %s518_s1 = inlined_call_operand.hbm [shape: f32[32,40], index: 1, kind: input, shape index: {}]   ;;  %s519_s2 = inlined_call_operand.hbm [shape: f32[32,40], index: 2, kind: input, shape index: {}]   ;;  %s520_s3 = inlined_call_operand.vmem [shape: s32[8,40], index: 3, kind: input, shape index: {}]   ;;  %s521_s4 = inlined_call_operand.hbm [shape: f32[1,8,128], index: 4, kind: output, shape index: {}]  }
   0x1   :  { %10 = vsyncpa [#allocation6], 0 }
   0x2   :  { %11 = vsyncpa [#allocation4], 0  ;;  %s426_s15 = smov [#allocation5]   ;;  %s332_s19 = scalar_lea.hbm %s518_s1, 512 }
   0x3   :  { %s27_s16 = sshll.u32 %s426_s15, 4  ;;  %p333_p0 = scmp.ne.s32.totalorder %s518_s1, %s332_s19  ;;  %s28_s16 = int_to_ptr.vmem [resolvable:$true] %s27_s16 }
   0x4   :  { %p336_p1 = scmp.lt.u32.totalorder %s332_s19, %s518_s1 }
   0x6   :  { %p338_p2 = pnand %p336_p1, %p333_p0 }
   0x8   :  { %341 = shalt.err (!%p338_p2)
}
   0x9   :  { %s342_s24 = scalar_lea.vmem %s28_s16, 512  ;;  %p347_p4 = scmp.lt.s32.totalorder %s28_s16, %s28_s16 }
   0xa   :  { %p343_p3 = scmp.ne.s32.totalorder %s28_s16, %s342_s24  ;;  %p348_p5 = scmp.lt.s32.totalorder %s342_s24, %s342_s24 }
   0xc   :  { %p349_p6 = por %p348_p5, %p347_p4 }
   0xe   :  { %p350_p7 = pnand %p349_p6, %p343_p3 }
  0x10   :  { %353 = shalt.err (!%p350_p7)
}
  0x11   :  { %s427_s25 = smov 128   ;;  %s428_s26 = smov 8  }
  0x12   :  { %33 = dma.hbm_to_vmem [thread:$0]  %s518_s1, 512, %s28_s16, [#allocation6], %s427_s25, %s427_s25, %s428_s26  }
  0x13   :  { %s429_s29 = smov [#allocation2]   ;;  %s430_s5 = smov [#allocation7]  }
  0x14   :  { %s18_s30 = sshll.u32 %s429_s29, 4  ;;  %s39_s6 = sshll.u32 %s430_s5, 4  ;;  %s19_s30 = int_to_ptr.vmem [resolvable:$true] %s18_s30  ;;  %s40_s6 = int_to_ptr.vmem [resolvable:$true] %s39_s6 }
  0x15   :  { %s354_s9 = scalar_lea.hbm %s517_s0, 128 }
  0x16   :  { %p355_p8 = scmp.ne.s32.totalorder %s517_s0, %s354_s9  ;;  %p358_p9 = scmp.lt.u32.totalorder %s354_s9, %s517_s0 }
  0x18   :  { %p360_p10 = pnand %p358_p9, %p355_p8 }
  0x1a   :  { %363 = shalt.err (!%p360_p10)
}
  0x1b   :  { %s364_s1 = scalar_lea.vmem %s19_s30, 128  ;;  %p369_p12 = scmp.lt.s32.totalorder %s19_s30, %s19_s30 }
  0x1c   :  { %p365_p11 = scmp.ne.s32.totalorder %s19_s30, %s364_s1  ;;  %p370_p13 = scmp.lt.s32.totalorder %s364_s1, %s364_s1 }
  0x1e   :  { %p371_p0 = por %p370_p13, %p369_p12 }
  0x20   :  { %p372_p1 = pnand %p371_p0, %p365_p11 }
  0x22   :  { %375 = shalt.err (!%p372_p1)
}
  0x23   :  { %21 = dma.hbm_to_vmem [thread:$0]  %s517_s0, 128, %s19_s30, [#allocation3]  }
  0x24   :  { %s376_s18 = scalar_lea.hbm %s519_s2, 512 }
  0x25   :  { %p377_p2 = scmp.ne.s32.totalorder %s519_s2, %s376_s18  ;;  %p380_p3 = scmp.lt.u32.totalorder %s376_s18, %s519_s2 }
  0x27   :  { %p382_p4 = pnand %p380_p3, %p377_p2 }
  0x29   :  { %385 = shalt.err (!%p382_p4)
}
  0x2a   :  { %s386_s23 = scalar_lea.vmem %s40_s6, 512  ;;  %p391_p6 = scmp.lt.s32.totalorder %s40_s6, %s40_s6 }
  0x2b   :  { %p387_p5 = scmp.ne.s32.totalorder %s40_s6, %s386_s23  ;;  %p392_p7 = scmp.lt.s32.totalorder %s386_s23, %s386_s23 }
  0x2d   :  { %p393_p8 = por %p392_p7, %p391_p6 }
  0x2f   :  { %p394_p9 = pnand %p393_p8, %p387_p5 }
  0x31   :  { %397 = shalt.err (!%p394_p9)
}
  0x32   :  { %45 = dma.hbm_to_vmem [thread:$0]  %s519_s2, 512, %s40_s6, [#allocation6], %s427_s25, %s427_s25, %s428_s26  }
  0x33   :  { %420 = dma.done.wait [#allocation3], 128  }
  0x34   :  { %421 = vsyncadd [#allocation3], 4294967168 }
  0x35   :  { %422 = dma.done.wait [#allocation6], 1024  }
  0x36   :  { %423 = vsyncadd [#allocation6], 4294966272  ;;  %v431_v0 = vmov 0.0|0.0   ;;  %vm432_vm0 = vmmov 0   ;;  %v433_v1 = vmov 0.0   ;;  %v60_v2 = vld [vmem:[#allocation5] sm:$0xff] }
  0x37   :  { %303 = vmatprep.subr.bf16.mxu0 %v431_v0  ;;  %289 = vmatprep.mubr.msk.f32.mxu0 %vm432_vm0, %v433_v1  ;;  %v61_v3 = vld [vmem:[#allocation5 + $0x8] sm:$0xff]  ;;  %v62_v4 = vld [vmem:[#allocation5 + $0x10] sm:$0xff]  ;;  %v63_v6 = vld [vmem:[#allocation5 + $0x18] sm:$0xff]  ;;  %vm64_vm1 = vcmask 261120   ;;  %vm240_vm3 = vcmask 326656  }
  0x38   :  { %309 = vmatprep.subr.bf16.mxu1 %v431_v0  ;;  %300 = vmatprep.mubr.msk.f32.mxu1 %vm432_vm0, %v433_v1  ;;  %v304_v5 = vpack.c.bf16 %v61_v3, %v60_v2  ;;  %v138_v7 = vld [vmem:[#allocation7] sm:$0xff]  ;;  %v139_v8 = vld [vmem:[#allocation7 + $0x8] sm:$0xff]  ;;  %v140_v9 = vld [vmem:[#allocation7 + $0x10] sm:$0xff]  ;;  %v307_v11 = vpack.c.bf16 %v63_v6, %v62_v4 }
  0x39   :  { %v141_v10 = vld [vmem:[#allocation7 + $0x18] sm:$0xff]  ;;  %v310_v13 = vpack.c.bf16 %v139_v8, %v138_v7 }
  0x3a   :  { %305 = vmatpush3.bf16.msra.mxu0 %v304_v5  ;;  %v57_v12 = vld [vmem:[#allocation2] sm:$0xff]  ;;  %v313_v14 = vpack.c.bf16 %v141_v10, %v140_v9 }
  0x3b   :  { %306 = vmatprep.subr.bf16.mxu0 %v431_v0  ;;  %311 = vmatpush3.bf16.msra.mxu1 %v310_v13  ;;  %v59_v15 = vmul.f32 %v57_v12, %v57_v12  ;;  %v58_v22 = vld [vmem:[%s520_s3] sm:$0xff]  ;;  %s434_s3 = smov [#allocation8]  }
  0x3c   :  { %312 = vmatprep.subr.bf16.mxu1 %v431_v0  ;;  %vm227_vm2 = vcmp.eq.s32.totalorder %v58_v22, 0  ;;  %s259_s26 = sshll.u32 %s434_s3, 4  ;;  %s260_s26 = int_to_ptr.vmem [resolvable:$true] %s259_s26 }
  0x3d   :  { %s398_s28 = scalar_lea.vmem %s260_s26, 128  ;;  %p403_p11 = scmp.lt.s32.totalorder %s260_s26, %s260_s26 }
  0x3e   :  { %308 = vmatpush3.bf16.msra.mxu0 %v307_v11  ;;  %p399_p10 = scmp.ne.s32.totalorder %s260_s26, %s398_s28  ;;  %p404_p12 = scmp.lt.s32.totalorder %s398_s28, %s398_s28 }
  0x3f   :  { %314 = vmatpush3.bf16.msra.mxu1 %v313_v14 }
  0x40   :  { %p405_p13 = por %p404_p12, %p403_p11 }
  0x41   :  { %290 = vmatmul.mubr.msk.f32.vlgmr.msra.gmra.mrb[0].mxu0 %vm64_vm1, %v59_v15 }
  0x42   :  { %301 = vmatmul.mubr.msk.f32.vlgmr.msra.gmra.mrb[0].mxu1 %vm64_vm1, %v57_v12  ;;  %p406_p0 = pnand %p405_p13, %p399_p10 }
 0x114   :  { %v134_v16 = vpop.f32.mrb[0].mxu0 }
 0x115   :  { %326 = vrsqrt.f32 %v134_v16  ;;  %v291_v17 = vpop.f32.mrb[1].mxu0  ;;  %v211_v18 = vpop.f32.mrb[0].mxu1 }
 0x116   :  { %v302_v19 = vpop.f32.mrb[1].mxu1 }
 0x11f   :  { %v327_v20 = vpop.eup %326 }
 0x120   :  { %v225_v21 = vmul.f32 43.321697, %v327_v20 }
 0x122   :  { %v226_v23 = vmul.f32 %v225_v21, %v211_v18 }
 0x124   :  { %v228_v24 = vsub.f32 0.0, %v226_v23 }
 0x126   :  { %v229_v25 = vsel %vm227_vm2, %v226_v23, %v228_v24 }
 0x127   :  { %v231_v26 = vand.u32 2147483647, %v229_v25  ;;  %v230_v32 = vmax.f32 %v229_v25, 0.0 }
 0x129   :  { %v232_v27 = vsub.f32 0.0, %v231_v26 }
 0x12b   :  { %v233_v28 = vmul.f32 1.442695, %v232_v27 }
 0x12d   :  { %328 = vpow2.f32 %v233_v28 }
 0x137   :  { %v329_v29 = vpop.eup %328 }
 0x138   :  { %v235_v30 = vadd.f32 1.0, %v329_v29 }
 0x13a   :  { %330 = vlog2.f32 %v235_v30 }
 0x144   :  { %v331_v31 = vpop.eup %330 }
 0x145   :  { %v237_v33 = vmul.f32 0.6931472, %v331_v31 }
 0x147   :  { %v238_v34 = vadd.f32 %v237_v33, %v230_v32 }
 0x149   :  { %v241_v35 = vsel %vm240_vm3, %v238_v34, 0.0 }
 0x14a   :  { %242 = vadd.xlane.f32.xlu0 %v241_v35 }
 0x1d7   :  { %v243_v36 = vpop.xlane.xlu0 %242 }
 0x1d8   :  { %v244_v37 = vrot.slane %v243_v36, 4 }
 0x1da   :  { %v245_v38 = vadd.f32 %v244_v37, %v243_v36 }
 0x1dc   :  { %v246_v39 = vrot.slane %v245_v38, 2 }
 0x1de   :  { %v247_v40 = vadd.f32 %v246_v39, %v245_v38 }
 0x1e0   :  { %v248_v41 = vrot.slane %v247_v40, 1 }
 0x1e2   :  { %v249_v42 = vadd.f32 %v248_v41, %v247_v40 }
 0x1e4   :  { %315 = vpush %v249_v42 }
 0x215   :  { %s316_s27 = spop %315 }
 0x216   :  { %v251_v43 = vstv %s316_s27 }
 0x217   :  { %252 = vst [vmem:[#allocation8] sm:$0xff] %v251_v43 }
 0x218   :  { %409 = shalt.err (!%p406_p0)
}
 0x219   :  { %s410_s5 = scalar_lea.hbm %s521_s4, 128 }
 0x21a   :  { %p411_p1 = scmp.ne.s32.totalorder %s521_s4, %s410_s5  ;;  %p414_p2 = scmp.lt.u32.totalorder %s410_s5, %s521_s4 }
 0x21c   :  { %p416_p3 = pnand %p414_p2, %p411_p1 }
 0x21e   :  { %419 = shalt.err (!%p416_p3)
}
 0x21f   :  { %262 = dma.vmem_to_hbm [thread:$0]  %s260_s26, 128, %s521_s4, [#allocation4]  }
 0x220   :  { %424 = dma.done.wait [#allocation4], 128  }
 0x221   :  { %425 = vsyncadd [#allocation4], 4294967168 }
 0x222   :  { %266 = vsyncpa [#allocation3], 1 }
 0x223   :  { %267 = vsyncpa [#allocation6], 1 }
 0x224   :  { %268 = vsyncpa [#allocation4], 1 }

</bundles_post_ra>
